<compile_context>
chip_gen: v7x
topology: tpu7x:2x2x1
jax: 0.10.0
libtpu: 0.0.40
codegen_flags: <defaults>
</compile_context>

<pallas_src>
import jax
import jax.numpy as jnp
from jax.experimental import pallas as pl
from jax.experimental.pallas import tpu as pltpu


# ----------------------------- model config ---------------------------------
BRANCH_INPUT_DIM = 16
TRUNK_INPUT_DIM = 1
HIDDEN_DIMS = (32, 32)
OUTPUT_DIM = 64
BATCH = 8

LANES = 128            # lane width of every fused hidden/output layer
HALF = LANES // 2      # branch occupies lanes [0, HALF), trunk [HALF, LANES)
N_LAYERS = len(HIDDEN_DIMS) + 1
X_LANES = 32           # compact input-slab width: [u | y | 1 | zeros]
ONES_COL = BRANCH_INPUT_DIM + TRUNK_INPUT_DIM   # "bias lane" in the input slab
BB_MAX = 2048          # batch-tile cap (VMEM use at 2048 is only a few MiB)

assert BRANCH_INPUT_DIM + TRUNK_INPUT_DIM + 1 <= X_LANES <= LANES
assert X_LANES % 8 == 0
assert all(h <= HALF - 1 for h in HIDDEN_DIMS)   # keep lane 127 free for bias
assert OUTPUT_DIM <= HALF


def _round_up(x, m):
    return (x + m - 1) // m * m


def _cdiv(a, b):
    return -(-a // b)


# ------------------------------- kernel --------------------------------------
def deeponet_kernel(x_ref, w_ref, out_ref):
    # x_ref:   [BB, X_LANES]            = [u | y | 1 | zeros]
    # w_ref:   [N_LAYERS*128, 128]      block-diagonal fused weights (biases folded)
    # out_ref: [BB, 1]
    # Layer 0: only the first X_LANES weight rows of the layer-0 block matter.
    h = jnp.dot(x_ref[...], w_ref[0:X_LANES, :],
                preferred_element_type=jnp.float32)
    h = jnp.maximum(h, 0.0)
    for l in range(1, N_LAYERS):                      # static unroll
        w = w_ref[l * LANES:(l + 1) * LANES, :]       # static, tile-aligned view
        h = jnp.dot(h, w, preferred_element_type=jnp.float32)
        if l < N_LAYERS - 1:
            h = jnp.maximum(h, 0.0)
    # h: lanes [0,64) = 0.5*branch_out (0.5 folded into weights),
    #    lanes [64,128) = trunk_out.  roll by 64 pairs branch[k] with trunk[k]
    # in every lane; the full-lane sum double-counts, cancelling the 0.5.
    prod = h * pltpu.roll(h, shift=HALF, axis=1)
    out_ref[...] = jnp.sum(prod, axis=1, keepdims=True)     # [BB, 1]


# ------------------------------ wrappers --------------------------------------
def pack_params(branch_params, trunk_params):
    """Pack both MLPs into one [N_LAYERS*128, 128] block-diagonal f32 slab.

    Layer l occupies rows [l*128, (l+1)*128). Branch block writes to lanes
    [0, HALF), trunk block to [HALF, 128). Biases live in a dedicated row fed
    by a constant-1 lane propagated through the layers. The 0.5 of the
    roll-pairing epilogue is folded into the last-layer branch block.
    """
    n_layers = len(branch_params) // 2
    P = jnp.zeros((n_layers * LANES, LANES), jnp.float32)
    for l in range(n_layers):
        bw, bb = branch_params[2 * l], branch_params[2 * l + 1]
        tw, tb = trunk_params[2 * l], trunk_params[2 * l + 1]
        b_in, b_out = bw.shape
        t_in, t_out = tw.shape
        last = (l == n_layers - 1)
        if last:
            # Fold the 0.5 epilogue factor into the branch half only.
            bw = bw * 0.5
            bb = bb * 0.5
            # The roll-pairing epilogue needs matched output widths and every
            # other lane of the final layer to stay exactly zero.
            assert b_out == t_out, "roll pairing requires equal output dims"
        assert b_out <= HALF and HALF + t_out <= LANES
        if not last:
            assert HALF + t_out <= LANES - 1       # keep the bias lane clear
        base = l * LANES
        if l == 0:
            b_row0, t_row0, ones_row = 0, b_in, b_in + t_in
            assert b_in + t_in + 1 <= X_LANES      # layer-0 K fits the input slab
            assert ones_row == ONES_COL            # keep wrapper/pack in sync
        else:
            b_row0, t_row0, ones_row = 0, HALF, LANES - 1
        P = P.at[base + b_row0: base + b_row0 + b_in, 0:b_out].set(bw)
        P = P.at[base + t_row0: base + t_row0 + t_in, HALF:HALF + t_out].set(tw)
        P = P.at[base + ones_row, 0:b_out].set(bb.reshape(-1))
        P = P.at[base + ones_row, HALF:HALF + t_out].set(tb.reshape(-1))
        if not last:
            P = P.at[base + ones_row, LANES - 1].set(1.0)   # propagate bias lane
    return P


def deeponet1d_forward(u, y, packed_w):
    """u: [B, branch_in], y: [B, trunk_in], packed_w: pack_params(...)."""
    B = u.shape[0]

    # Adaptive batch tiling: big BB (amortize the ~0.35us per-step overhead),
    # small padding waste, and an even grid length when >1 step so v7x's two
    # TensorCores both get work under dimension_semantics=("parallel",).
    n_steps = _cdiv(B, BB_MAX)
    if n_steps > 1:
        n_steps = _round_up(n_steps, 2)
    BB = _round_up(max(_cdiv(B, n_steps), 8), 8)
    B_pad = n_steps * BB

    # Compact input slab [u | y | 1 | zeros] of width X_LANES, built in one
    # fused concatenate (no full-width zeros + scatter passes).
    pieces = [
        u.astype(jnp.float32),
        y.astype(jnp.float32),
        jnp.ones((B, 1), jnp.float32),
    ]
    pad_lanes = X_LANES - ONES_COL - 1
    if pad_lanes > 0:
        pieces.append(jnp.zeros((B, pad_lanes), jnp.float32))
    x = jnp.concatenate(pieces, axis=1)
    if B_pad != B:
        x = jnp.concatenate(
            [x, jnp.zeros((B_pad - B, X_LANES), jnp.float32)], axis=0)

    out = pl.pallas_call(
        deeponet_kernel,
        out_shape=jax.ShapeDtypeStruct((B_pad, 1), jnp.float32),
        grid=(n_steps,),
        in_specs=[
            pl.BlockSpec((BB, X_LANES), lambda i: (i, 0)),
            # Grid-invariant weight slab: constant index_map -> DMA'd once.
            pl.BlockSpec((N_LAYERS * LANES, LANES), lambda i: (0, 0)),
        ],
        out_specs=pl.BlockSpec((BB, 1), lambda i: (i, 0)),
        compiler_params=pltpu.CompilerParams(
            dimension_semantics=("parallel",)),
    )(x, packed_w)
    return out[:B]


# ------------------------------ init / reference ------------------------------
def init_linear(key, in_dim, out_dim):
    """Deterministic init mimicking nn.Linear (uniform(-1/sqrt(in), 1/sqrt(in)))."""
    kw, kb = jax.random.split(key)
    bound = 1.0 / jnp.sqrt(jnp.float32(in_dim))
    w = jax.random.uniform(kw, (in_dim, out_dim), jnp.float32, -bound, bound)
    b = jax.random.uniform(kb, (1, out_dim), jnp.float32, -bound, bound)
    return w, b


def init_mlp(key, in_dim, hidden_dims, out_dim):
    dims = [in_dim, *hidden_dims, out_dim]
    params = []
    keys = jax.random.split(key, len(dims) - 1)
    for k, di, do in zip(keys, dims[:-1], dims[1:]):
        w, b = init_linear(k, di, do)
        params.extend([w, b])
    return params


def reference_forward(u, y, branch_params, trunk_params):
    def mlp(x, params):
        n = len(params) // 2
        h = x
        for l in range(n):
            w, b = params[2 * l], params[2 * l + 1]
            h = jnp.dot(h, w, precision=jax.lax.Precision.HIGHEST) + b
            if l < n - 1:
                h = jnp.maximum(h, 0.0)
        return h
    bo = mlp(u, branch_params)
    to = mlp(y, trunk_params)
    return jnp.sum(bo * to, axis=1, keepdims=True)


if __name__ == "__main__":
    key = jax.random.PRNGKey(0)
    k_u, k_y, k_branch, k_trunk = jax.random.split(key, 4)

    u = jax.random.normal(k_u, (BATCH, BRANCH_INPUT_DIM), jnp.float32)
    y = jax.random.normal(k_y, (BATCH, TRUNK_INPUT_DIM), jnp.float32)

    branch_params = init_mlp(k_branch, BRANCH_INPUT_DIM, HIDDEN_DIMS, OUTPUT_DIM)
    trunk_params = init_mlp(k_trunk, TRUNK_INPUT_DIM, HIDDEN_DIMS, OUTPUT_DIM)

    packed_w = pack_params(branch_params, trunk_params)

    out = deeponet1d_forward(u, y, packed_w)
    out = jax.block_until_ready(out)

    ref = jax.block_until_ready(reference_forward(u, y, branch_params, trunk_params))
    assert out.shape == (BATCH, 1), out.shape
    assert jnp.allclose(out, ref, atol=2e-4, rtol=2e-4), (out, ref)

    print("KERNEL_OK")
</pallas_src>

<mosaic_0001>
module attributes {stable_mosaic.version = 11 : i64} {
  func.func @deeponet_kernel(%arg0: i32, %arg1: memref<8x32xf32, #tpu.memory_space<vmem>>, %arg2: memref<384x128xf32, #tpu.memory_space<vmem>>, %arg3: memref<8x1xf32, #tpu.memory_space<vmem>>) attributes {dimension_semantics = [#tpu.dimension_semantics<parallel>], iteration_bounds = array<i64: 1>, scalar_prefetch = 0 : i64, scratch_operands = 0 : i64, tpu.core_type = #tpu.core_type<tc>, window_params = [{transform_indices = @transform_0, window_bounds = array<i64: 8, 32>}, {pipeline_mode = #tpu.pipeline_mode<synchronous>, transform_indices = @transform_1, window_bounds = array<i64: 384, 128>}, {transform_indices = @transform_2, window_bounds = array<i64: 8, 1>}]} {
    %c0 = arith.constant 0 : index
    %c0_0 = arith.constant 0 : index
    %0 = vector.load %arg1[%c0, %c0_0] : memref<8x32xf32, #tpu.memory_space<vmem>>, vector<8x32xf32>
    %c0_1 = arith.constant 0 : index
    %c0_2 = arith.constant 0 : index
    %1 = vector.load %arg2[%c0_1, %c0_2] : memref<384x128xf32, #tpu.memory_space<vmem>>, vector<32x128xf32>
    %cst = arith.constant dense<0.000000e+00> : vector<8x128xf32>
    %2 = tpu.matmul %0, %1, %cst {dimension_numbers = #tpu.dot_dimension_numbers<[1], [0], [0], [1], [0, 0, 1, 1], [], []>} : vector<8x32xf32>, vector<32x128xf32>, vector<8x128xf32> -> vector<8x128xf32>
    %cst_3 = arith.constant 0.000000e+00 : f32
    %3 = vector.broadcast %cst_3 : f32 to vector<8x128xf32>
    %4 = arith.maximumf %2, %3 : vector<8x128xf32>
    %c128 = arith.constant 128 : index
    %c0_4 = arith.constant 0 : index
    %5 = vector.load %arg2[%c128, %c0_4] : memref<384x128xf32, #tpu.memory_space<vmem>>, vector<128x128xf32>
    %cst_5 = arith.constant dense<0.000000e+00> : vector<8x128xf32>
    %6 = tpu.matmul %4, %5, %cst_5 {dimension_numbers = #tpu.dot_dimension_numbers<[1], [0], [0], [1], [0, 0, 1, 1], [], []>} : vector<8x128xf32>, vector<128x128xf32>, vector<8x128xf32> -> vector<8x128xf32>
    %cst_6 = arith.constant 0.000000e+00 : f32
    %7 = vector.broadcast %cst_6 : f32 to vector<8x128xf32>
    %8 = arith.maximumf %6, %7 : vector<8x128xf32>
    %c256 = arith.constant 256 : index
    %c0_7 = arith.constant 0 : index
    %9 = vector.load %arg2[%c256, %c0_7] : memref<384x128xf32, #tpu.memory_space<vmem>>, vector<128x128xf32>
    %cst_8 = arith.constant dense<0.000000e+00> : vector<8x128xf32>
    %10 = tpu.matmul %8, %9, %cst_8 {dimension_numbers = #tpu.dot_dimension_numbers<[1], [0], [0], [1], [0, 0, 1, 1], [], []>} : vector<8x128xf32>, vector<128x128xf32>, vector<8x128xf32> -> vector<8x128xf32>
    %c64_i32 = arith.constant 64 : i32
    %11 = tpu.dynamic_rotate %10 by %c64_i32 dim 1 : vector<8x128xf32>, i32 -> vector<8x128xf32>
    %12 = arith.mulf %10, %11 : vector<8x128xf32>
    %cst_9 = arith.constant dense<0.000000e+00> : vector<8xf32>
    %13 = vector.multi_reduction <add>, %12, %cst_9 [1] : vector<8x128xf32> to vector<8xf32>
    %14 = vector.shape_cast %13 : vector<8xf32> to vector<8x1xf32>
    %c0_10 = arith.constant 0 : index
    %c0_11 = arith.constant 0 : index
    %15 = vector.load %arg3[%c0_10, %c0_11] : memref<8x1xf32, #tpu.memory_space<vmem>>, vector<8x1xf32>
    tpu.vector_store %arg3[%c0_10, %c0_11], %14 {strides = array<i32>} : memref<8x1xf32, #tpu.memory_space<vmem>>, vector<8x1xf32>,
    return
  }
  func.func @transform_0(%arg0: i32) -> (i32, i32) {
    %c0_i32 = arith.constant 0 : i32
    %c0_i32_0 = arith.constant 0 : i32
    return %arg0, %c0_i32 : i32, i32
  }
  func.func @transform_1(%arg0: i32) -> (i32, i32) {
    %c0_i32 = arith.constant 0 : i32
    %c0_i32_0 = arith.constant 0 : i32
    %c0_i32_1 = arith.constant 0 : i32
    return %c0_i32, %c0_i32_0 : i32, i32
  }
  func.func @transform_2(%arg0: i32) -> (i32, i32) {
    %c0_i32 = arith.constant 0 : i32
    %c0_i32_0 = arith.constant 0 : i32
    return %arg0, %c0_i32 : i32, i32
  }
}

</mosaic_0001>

<bundles_post_ra>
// kernel: tpu_custom_call.1
= control target key start
LH: loop header
LB: loop body
LE: loop exit
PB: predicated region body
PF: predicated region fallthrough
CT: control target
= control target key end

     0   :  { %7 = vsyncpa [#allocation3], 0  ;;  %s612_s0 = inlined_call_operand.hbm [shape: f32[8,32], index: 0, kind: input, shape index: {}]   ;;  %s613_s1 = inlined_call_operand.hbm [shape: f32[384,128], index: 1, kind: input, shape index: {}]   ;;  %s614_s2 = inlined_call_operand.vmem [shape: f32[8,1], index: 2, kind: output, shape index: {}]  }
   0x1   :  { %8 = vsyncpa [#allocation5], 0  ;;  %s534_s9 = smov [#allocation2]   ;;  %s535_s11 = smov [#allocation4]  }
   0x2   :  { %s15_s10 = sshll.u32 %s534_s9, 4  ;;  %s24_s12 = sshll.u32 %s535_s11, 4  ;;  %s16_s10 = int_to_ptr.vmem [resolvable:$true] %s15_s10  ;;  %s557_s12 = int_to_ptr.vmem [resolvable:$true] %s24_s12 }
   0x3   :  { %s486_s15 = scalar_lea.hbm %s612_s0, 128 }
   0x4   :  { %p487_p0 = scmp.ne.s32.totalorder %s612_s0, %s486_s15  ;;  %p490_p1 = scmp.lt.u32.totalorder %s486_s15, %s612_s0 }
   0x6   :  { %p492_p2 = pnand %p490_p1, %p487_p0 }
   0x8   :  { %495 = shalt.err (!%p492_p2)
}
   0x9   :  { %s496_s20 = scalar_lea.vmem %s16_s10, 128  ;;  %p501_p4 = scmp.lt.s32.totalorder %s16_s10, %s16_s10 }
   0xa   :  { %p497_p3 = scmp.ne.s32.totalorder %s16_s10, %s496_s20  ;;  %p502_p5 = scmp.lt.s32.totalorder %s496_s20, %s496_s20 }
   0xc   :  { %p503_p6 = por %p502_p5, %p501_p4 }
   0xe   :  { %p504_p7 = pnand %p503_p6, %p497_p3 }
  0x10   :  { %507 = shalt.err (!%p504_p7)
}
  0x11   :  { %18 = dma.hbm_to_vmem [thread:$0]  %s612_s0, 128, %s16_s10, [#allocation3]  }
  0x12   :  { %s508_s25 = scalar_lea.hbm %s613_s1, 6144 }
  0x13   :  { %p509_p8 = scmp.ne.s32.totalorder %s613_s1, %s508_s25  ;;  %p512_p9 = scmp.lt.u32.totalorder %s508_s25, %s613_s1 }
  0x15   :  { %p514_p10 = pnand %p512_p9, %p509_p8 }
  0x17   :  { %517 = shalt.err (!%p514_p10)
}
  0x18   :  { %s518_s30 = scalar_lea.vmem %s557_s12, 6144  ;;  %p523_p12 = scmp.lt.s32.totalorder %s557_s12, %s557_s12 }
  0x19   :  { %p519_p11 = scmp.ne.s32.totalorder %s557_s12, %s518_s30  ;;  %p524_p13 = scmp.lt.s32.totalorder %s518_s30, %s518_s30 }
  0x1b   :  { %p525_p0 = por %p524_p13, %p523_p12 }
  0x1d   :  { %p526_p1 = pnand %p525_p0, %p519_p11 }
  0x1f   :  { %529 = shalt.err (!%p526_p1)
}
  0x20   :  { %s536_s0 = smov 128   ;;  %s537_s3 = smov 8  }
  0x21   :  { %30 = dma.hbm_to_vmem [thread:$0]  %s613_s1, 6144, %s557_s12, [#allocation5], %s536_s0, %s536_s0, %s537_s3  }
  0x22   :  { %530 = dma.done.wait [#allocation3], 128  }
  0x23   :  { %531 = vsyncadd [#allocation3], 4294967168 }
  0x24   :  { %532 = dma.done.wait [#allocation5], 6144  }
  0x25   :  { %533 = vsyncadd [#allocation5], 4294961152  ;;  %v538_v0 = vmov 0.0|0.0   ;;  %vm539_vm0 = vmmov 0   ;;  %v540_v1 = vmov 0.0   ;;  %v38_v2 = vld [vmem:[#allocation4] sm:$0xff] }
  0x26   :  { %424 = vmatprep.subr.bf16.mxu0 %v538_v0  ;;  %351 = vmatprep.mubr.msk.f32.mxu0 %vm539_vm0, %v540_v1  ;;  %v39_v3 = vld [vmem:[#allocation4 + $0x8] sm:$0xff]  ;;  %v40_v4 = vld [vmem:[#allocation4 + $0x10] sm:$0xff]  ;;  %v41_v6 = vld [vmem:[#allocation4 + $0x18] sm:$0xff]  ;;  %vm42_vm1 = vcmask 261120   ;;  %s541_s1 = smov 64   ;;  %vm295_vm2 = vcmask 7168  }
  0x27   :  { %430 = vmatprep.subr.bf16.mxu1 %v538_v0  ;;  %386 = vmatprep.mubr.msk.f32.mxu1 %vm539_vm0, %v540_v1  ;;  %v425_v5 = vpack.c.bf16 %v39_v3, %v38_v2  ;;  %v117_v7 = vld [vmem:[#allocation4 + $0x80] sm:$0xff]  ;;  %v118_v8 = vld [vmem:[#allocation4 + $0x88] sm:$0xff]  ;;  %v119_v9 = vld [vmem:[#allocation4 + $0x90] sm:$0xff]  ;;  %v428_v11 = vpack.c.bf16 %v41_v6, %v40_v4 }
  0x28   :  { %v120_v10 = vld [vmem:[#allocation4 + $0x98] sm:$0xff]  ;;  %v431_v12 = vpack.c.bf16 %v118_v8, %v117_v7  ;;  %v121_v14 = vld [vmem:[#allocation4 + $0xa0] sm:$0xff]  ;;  %v122_v15 = vld [vmem:[#allocation4 + $0xa8] sm:$0xff] }
  0x29   :  { %426 = vmatpush3.bf16.msra.mxu0 %v425_v5  ;;  %v434_v13 = vpack.c.bf16 %v120_v10, %v119_v9  ;;  %v37_v16 = vld [vmem:[#allocation2] sm:$0xff]  ;;  %v437_v17 = vpack.c.bf16 %v122_v15, %v121_v14  ;;  %v123_v18 = vld [vmem:[#allocation4 + $0xb0] sm:$0xff]  ;;  %v125_v21 = vld [vmem:[#allocation4 + $0xc0] sm:$0xff] }
  0x2a   :  { %427 = vmatprep.subr.bf16.mxu0 %v538_v0  ;;  %432 = vmatpush3.bf16.msra.mxu1 %v431_v12  ;;  %v124_v19 = vld [vmem:[#allocation4 + $0xb8] sm:$0xff]  ;;  %v126_v22 = vld [vmem:[#allocation4 + $0xc8] sm:$0xff]  ;;  %v127_v24 = vld [vmem:[#allocation4 + $0xd0] sm:$0xff] }
  0x2b   :  { %433 = vmatprep.subr.bf16.mxu1 %v538_v0  ;;  %v440_v20 = vpack.c.bf16 %v124_v19, %v123_v18  ;;  %v443_v23 = vpack.c.bf16 %v126_v22, %v125_v21  ;;  %v128_v25 = vld [vmem:[#allocation4 + $0xd8] sm:$0xff]  ;;  %v129_v27 = vld [vmem:[#allocation4 + $0xe0] sm:$0xff]  ;;  %v130_v28 = vld [vmem:[#allocation4 + $0xe8] sm:$0xff] }
  0x2c   :  { %v446_v26 = vpack.c.bf16 %v128_v25, %v127_v24  ;;  %v449_v29 = vpack.c.bf16 %v130_v28, %v129_v27  ;;  %v131_v30 = vld [vmem:[#allocation4 + $0xf0] sm:$0xff]  ;;  %v132_v31 = vld [vmem:[#allocation4 + $0xf8] sm:$0xff]  ;;  %v204_v33 = vld [vmem:[#allocation4 + $0x100] sm:$0xff] }
  0x2d   :  { %429 = vmatpush3.bf16.msra.mxu0 %v428_v11  ;;  %v452_v32 = vpack.c.bf16 %v132_v31, %v131_v30  ;;  %v205_v34 = vld [vmem:[#allocation4 + $0x108] sm:$0xff]  ;;  %v206_v35 = vld [vmem:[#allocation4 + $0x110] sm:$0xff]  ;;  %v207_v37 = vld [vmem:[#allocation4 + $0x118] sm:$0xff] }
  0x2e   :  { %454 = vmatprep.subr.bf16.mxu0 %v538_v0  ;;  %435 = vmatpush3.bf16.msra.mxu1 %v434_v13  ;;  %v455_v36 = vpack.c.bf16 %v205_v34, %v204_v33  ;;  %v458_v38 = vpack.c.bf16 %v207_v37, %v206_v35  ;;  %v208_v39 = vld [vmem:[#allocation4 + $0x120] sm:$0xff]  ;;  %v209_v40 = vld [vmem:[#allocation4 + $0x128] sm:$0xff]  ;;  %v210_v42 = vld [vmem:[#allocation4 + $0x130] sm:$0xff] }
  0x2f   :  { %436 = vmatprep.subr.bf16.mxu1 %v538_v0  ;;  %v461_v41 = vpack.c.bf16 %v209_v40, %v208_v39  ;;  %v211_v43 = vld [vmem:[#allocation4 + $0x138] sm:$0xff]  ;;  %v212_v45 = vld [vmem:[#allocation4 + $0x140] sm:$0xff]  ;;  %v213_v46 = vld [vmem:[#allocation4 + $0x148] sm:$0xff] }
  0x30   :  { %352 = vmatmul.mubr.msk.f32.vlgmr.msra.gmra.mrb[0].mxu0 %vm42_vm1, %v37_v16  ;;  %v464_v44 = vpack.c.bf16 %v211_v43, %v210_v42  ;;  %v467_v47 = vpack.c.bf16 %v213_v46, %v212_v45  ;;  %v214_v48 = vld [vmem:[#allocation4 + $0x150] sm:$0xff]  ;;  %v215_v49 = vld [vmem:[#allocation4 + $0x158] sm:$0xff]  ;;  %v216_v51 = vld [vmem:[#allocation4 + $0x160] sm:$0xff] }
  0x31   :  { %421 = vmatprep.mubr.msk.f32.mxu0 %vm539_vm0, %v540_v1  ;;  %456 = vmatpush3.bf16.msra.mxu0 %v455_v36  ;;  %v470_v50 = vpack.c.bf16 %v215_v49, %v214_v48  ;;  %v217_v52 = vld [vmem:[#allocation4 + $0x168] sm:$0xff]  ;;  %v218_v57 = vld [vmem:[#allocation4 + $0x170] sm:$0xff]  ;;  %v219_v58 = vld [vmem:[#allocation4 + $0x178] sm:$0xff] }
  0x32   :  { %438 = vmatpush3.bf16.msra.mxu1 %v437_v17  ;;  %457 = vmatprep.subr.bf16.mxu0 %v538_v0  ;;  %v473_v53 = vpack.c.bf16 %v217_v52, %v216_v51  ;;  %v476_v59 = vpack.c.bf16 %v219_v58, %v218_v57 }
  0x33   :  { %439 = vmatprep.subr.bf16.mxu1 %v538_v0 }
  0x35   :  { %459 = vmatpush3.bf16.msra.mxu0 %v458_v38 }
  0x36   :  { %441 = vmatpush3.bf16.msra.mxu1 %v440_v20  ;;  %460 = vmatprep.subr.bf16.mxu0 %v538_v0 }
  0x37   :  { %442 = vmatprep.subr.bf16.mxu1 %v538_v0 }
  0x39   :  { %462 = vmatpush3.bf16.msra.mxu0 %v461_v41 }
  0x3a   :  { %444 = vmatpush3.bf16.msra.mxu1 %v443_v23  ;;  %463 = vmatprep.subr.bf16.mxu0 %v538_v0 }
  0x3b   :  { %445 = vmatprep.subr.bf16.mxu1 %v538_v0 }
  0x3d   :  { %465 = vmatpush3.bf16.msra.mxu0 %v464_v44 }
  0x3e   :  { %447 = vmatpush3.bf16.msra.mxu1 %v446_v26  ;;  %466 = vmatprep.subr.bf16.mxu0 %v538_v0 }
  0x3f   :  { %448 = vmatprep.subr.bf16.mxu1 %v538_v0 }
  0x41   :  { %468 = vmatpush3.bf16.msra.mxu0 %v467_v47 }
  0x42   :  { %450 = vmatpush3.bf16.msra.mxu1 %v449_v29  ;;  %469 = vmatprep.subr.bf16.mxu0 %v538_v0 }
  0x43   :  { %451 = vmatprep.subr.bf16.mxu1 %v538_v0 }
  0x45   :  { %471 = vmatpush3.bf16.msra.mxu0 %v470_v50 }
  0x46   :  { %453 = vmatpush3.bf16.msra.mxu1 %v452_v32  ;;  %472 = vmatprep.subr.bf16.mxu0 %v538_v0 }
  0x49   :  { %474 = vmatpush3.bf16.msra.mxu0 %v473_v53 }
  0x4a   :  { %475 = vmatprep.subr.bf16.mxu0 %v538_v0 }
  0x4d   :  { %477 = vmatpush3.bf16.msra.mxu0 %v476_v59 }
 0x103   :  { %v112_v54 = vpop.f32.mrb[0].mxu0 }
 0x104   :  { %v116_v55 = vmax.f32 %v112_v54, 0.0  ;;  %v353_v56 = vpop.f32.mrb[1].mxu0 }
 0x106   :  { %387 = vmatmul.mubr.f32.vlgmr.msra.gmra.mrb[0].mxu1 %v116_v55 }
 0x1d9   :  { %v199_v60 = vpop.f32.mrb[0].mxu1 }
 0x1da   :  { %v203_v61 = vmax.f32 %v199_v60, 0.0  ;;  %v388_v62 = vpop.f32.mrb[1].mxu1 }
 0x1dc   :  { %422 = vmatmul.mubr.f32.vlgmr.msra.gmra.mrb[2].mxu0 %v203_v61 }
 0x2af   :  { %v286_v63 = vpop.f32.mrb[2].mxu0 }
 0x2b0   :  { %290 = vrot.lane.b32.xlu0 %v286_v63, %s541_s1  ;;  %v423_v1 = vpop.f32.mrb[3].mxu0 }
 0x322   :  { %v291_v2 = vpop.permute.xlu0 %290 }
 0x323   :  { %v292_v3 = vmul.f32 %v291_v2, %v286_v63 }
 0x325   :  { %293 = vadd.xlane.f32.xlu0 %v292_v3 }
 0x3b2   :  { %v294_v0 = vpop.xlane.xlu0 %293 }
 0x3b3   :  { %296 = vst.msk [vmem:[%s614_s2] sm:$0xff] %vm295_vm2, %v294_v0 }
 0x3b4   :  { %301 = vsyncpa [#allocation3], 1 }
 0x3b5   :  { %302 = vsyncpa [#allocation5], 1 }

</bundles_post_ra>
